<compile_context>
chip_gen: v5e
topology: v5e:2x2
jax: 0.10.0
libtpu: 0.0.40
codegen_flags: <defaults>
</compile_context>

<pallas_src>
import jax
import jax.numpy as jnp
from jax.experimental import pallas as pl
from jax.experimental.pallas import tpu as pltpu


def _round_up(x, m):
    return ((x + m - 1) // m) * m


def _cdiv(a, b):
    return (a + b - 1) // b


# ---------------------------------------------------------------------------
# Kernels (one batch tile per grid step; all weights constant-index / resident)
# ---------------------------------------------------------------------------

def _linear_fused_kernel(x_ref, w_ref, b_ref, out_ref):
    # logits = cls @ (reduce_W^T @ cls_W^T) + (reduce_b @ cls_W^T + cls_b)
    # (exact fusion: no nonlinearity between the two linears)
    xb = x_ref[...].astype(jnp.bfloat16)
    out_ref[...] = (jnp.dot(xb, w_ref[...], preferred_element_type=jnp.float32)
                    + b_ref[...]).astype(out_ref.dtype)


def _euclidean_kernel(x_ref, wrT_ref, br_ref, wnT_ref, out_ref):
    xb = x_ref[...].astype(jnp.bfloat16)
    pooled = jnp.dot(xb, wrT_ref[...],
                     preferred_element_type=jnp.float32) + br_ref[...]
    sq = jnp.sum(pooled * pooled, axis=1, keepdims=True)
    # == torch.nn.functional.normalize(p=2, dim=1, eps=1e-12)
    pn = pooled * jax.lax.rsqrt(jnp.maximum(sq, 1e-24))
    # ||pn||^2 == ||wn||^2 == 1 after normalization, so the original
    # `logits - w_sq.T - p_sq + 2` reduces exactly to `logits`.
    out_ref[...] = jnp.dot(pn.astype(wnT_ref.dtype), wnT_ref[...],
                           preferred_element_type=jnp.float32).astype(out_ref.dtype)


def _kernel_approx_kernel(x_ref, wrT_ref, br_ref, mwT_ref, pwT_ref, out_ref):
    # gamma is folded into mwT (x gamma/2) and pwT (x exp(-gamma/2)) at prep time.
    xb = x_ref[...].astype(jnp.bfloat16)
    pooled = jnp.dot(xb, wrT_ref[...],
                     preferred_element_type=jnp.float32) + br_ref[...]
    sq = jnp.sum(pooled * pooled, axis=1, keepdims=True)
    pn = (pooled * jax.lax.rsqrt(jnp.maximum(sq, 1e-24))).astype(jnp.bfloat16)
    proj = jnp.exp(jnp.dot(pn, mwT_ref[...], preferred_element_type=jnp.float32))
    out_ref[...] = jnp.dot(proj.astype(pwT_ref.dtype), pwT_ref[...],
                           preferred_element_type=jnp.float32).astype(out_ref.dtype)


# ---------------------------------------------------------------------------
# One-time weight preparation (hoisted out of the per-call forward path)
# ---------------------------------------------------------------------------

def prepare_params(params, *, gamma=1.0):
    f32 = jnp.float32
    rw = jnp.asarray(params["reduce_weight"], f32)   # (E, H)
    rb = jnp.asarray(params["reduce_bias"], f32)     # (E,)
    w = jnp.asarray(params["weight"], f32)           # (C, E)
    b = jnp.asarray(params["bias"], f32)             # (C,)
    mw = jnp.asarray(params["map_weight"], f32)      # (EE, E)

    E, H = rw.shape
    C = w.shape[0]
    EE = mw.shape[0]

    h_pad = _round_up(H, 128)     # lane-dense K dim for the first matmul
    e_pad = _round_up(E, 128)
    c_pad = _round_up(C, 128)
    ee_pad = _round_up(EE, 128)

    # linear path: exact algebraic fusion of the two linears
    w_fused = rw.T @ w.T                                                  # (H, C)
    b_fused = rb @ w.T + b                                                # (C,)
    w_fused = jnp.pad(w_fused, ((0, h_pad - H), (0, c_pad - C))).astype(jnp.bfloat16)
    b_fused = jnp.pad(b_fused, (0, c_pad - C))[None, :]                   # (1, c_pad) f32

    # shared reduce layer, pre-transposed + padded to (h_pad, e_pad)
    wrT = jnp.pad(rw.T, ((0, h_pad - H), (0, e_pad - E))).astype(jnp.bfloat16)
    br = jnp.pad(rb, (0, e_pad - E))[None, :]                             # (1, e_pad) f32

    # euclidean path: classifier weight pre-normalized (static), transposed
    wn = w * jax.lax.rsqrt(jnp.maximum(jnp.sum(w * w, axis=1, keepdims=True),
                                       1e-24))
    wnT = jnp.pad(wn, ((0, c_pad - C), (0, e_pad - E))).T.astype(jnp.bfloat16)

    # kernel-approx path, gamma folded in:
    #   proj_x = exp(pn @ mw.T * g/2 - g/2) = exp(-g/2) * exp(pn @ (mw.T * g/2))
    # so the kernel computes exp(pn @ mwT) @ pwT with
    #   mwT = mw.T * g/2    and    pwT = proj_w.T * exp(-g/2)
    proj_w = jnp.exp(wn @ mw.T * (gamma / 2.0) - gamma / 2.0)             # (C, EE)
    pwT = (jnp.pad(proj_w, ((0, c_pad - C), (0, ee_pad - EE))).T
           * jnp.exp(jnp.asarray(-gamma / 2.0, f32))).astype(jnp.bfloat16)  # (ee_pad, c_pad)
    mwT = jnp.pad(mw.T * (gamma / 2.0),
                  ((0, e_pad - E), (0, ee_pad - EE))).astype(jnp.bfloat16)  # (e_pad, ee_pad)

    return dict(H=H, E=E, C=C, EE=EE,
                h_pad=h_pad, e_pad=e_pad, c_pad=c_pad, ee_pad=ee_pad,
                gamma=gamma,
                w_fused=w_fused, b_fused=b_fused,
                wrT=wrT, br=br, wnT=wnT, mwT=mwT, pwT=pwT)


# ---------------------------------------------------------------------------
# Forward wrapper (batch-tiled pallas_call per mode)
# ---------------------------------------------------------------------------

def llm_classifier_forward(cls_output, prepped, *, euclidean=False,
                           kernel_approx=False, tile_b=512,
                           out_dtype=jnp.float32):
    """Pallas implementation of LLMClassifier.forward (post-backbone part)."""
    B, H = cls_output.shape
    assert H == prepped["H"]
    C = prepped["C"]
    h_pad, e_pad = prepped["h_pad"], prepped["e_pad"]
    c_pad, ee_pad = prepped["c_pad"], prepped["ee_pad"]

    # --- batch tiling --------------------------------------------------------
    # Small batches: single block equal to the full batch dim (no pad at all).
    # Large batches: balanced tiles (multiple of 16) so padding waste is tiny
    # and nb >= 2 keeps v7x megacore busy.  Cap ~512 rows keeps the f32 x tile
    # double-buffer within v7x's smaller VMEM even for H ~ 4096.
    tile_b = max(16, (int(tile_b) // 16) * 16)
    if B <= tile_b:
        nb, tile_b_eff = 1, B
    else:
        nb = _cdiv(B, tile_b)
        tile_b_eff = _round_up(_cdiv(B, nb), 16)
    b_pad = nb * tile_b_eff

    # x stays f32 in HBM and is cast to bf16 inside the kernel (no separate
    # wrapper cast pass).  Padding only materializes when H is not a multiple
    # of 128 (demo) or when a large batch is not tile-divisible (rare/small).
    pad_b, pad_h = b_pad - B, h_pad - H
    x = cls_output
    if pad_b or pad_h:
        x = jnp.pad(x, ((0, pad_b), (0, pad_h)))

    out_shape = jax.ShapeDtypeStruct((b_pad, c_pad), out_dtype)
    parallel = pltpu.CompilerParams(dimension_semantics=("parallel",))
    x_spec = pl.BlockSpec((tile_b_eff, h_pad), lambda i: (i, 0))
    out_spec = pl.BlockSpec((tile_b_eff, c_pad), lambda i: (i, 0))
    x_bytes = int(x.size * x.dtype.itemsize)
    out_bytes = int(b_pad * c_pad * jnp.dtype(out_dtype).itemsize)

    if kernel_approx:
        # mwT + pwT are resident in VMEM (~(e_pad+c_pad)*ee_pad*2 B ≈ 768 KiB at
        # the module defaults E=64, scale=24): constant-index BlockSpecs are
        # DMA'd once for the whole grid, so no EE K-tiling is needed.
        out = pl.pallas_call(
            _kernel_approx_kernel,
            out_shape=out_shape,
            grid_spec=pltpu.PrefetchScalarGridSpec(
                num_scalar_prefetch=0,
                grid=(nb,),
                in_specs=[
                    x_spec,
                    pl.BlockSpec((h_pad, e_pad), lambda i: (0, 0)),
                    pl.BlockSpec((1, e_pad), lambda i: (0, 0)),
                    pl.BlockSpec((e_pad, ee_pad), lambda i: (0, 0)),
                    pl.BlockSpec((ee_pad, c_pad), lambda i: (0, 0)),
                ],
                out_specs=out_spec,
            ),
            compiler_params=parallel,
            cost_estimate=pl.CostEstimate(
                flops=2 * b_pad * (h_pad * e_pad + e_pad * ee_pad + ee_pad * c_pad),
                transcendentals=b_pad * (ee_pad + 1),
                bytes_accessed=int(x_bytes + prepped["wrT"].nbytes
                                   + prepped["br"].nbytes + prepped["mwT"].nbytes
                                   + prepped["pwT"].nbytes + out_bytes)),
        )(x, prepped["wrT"], prepped["br"], prepped["mwT"], prepped["pwT"])
        return out[:B, :C]

    if euclidean:
        out = pl.pallas_call(
            _euclidean_kernel,
            out_shape=out_shape,
            grid_spec=pltpu.PrefetchScalarGridSpec(
                num_scalar_prefetch=0,
                grid=(nb,),
                in_specs=[
                    x_spec,
                    pl.BlockSpec((h_pad, e_pad), lambda i: (0, 0)),
                    pl.BlockSpec((1, e_pad), lambda i: (0, 0)),
                    pl.BlockSpec((e_pad, c_pad), lambda i: (0, 0)),
                ],
                out_specs=out_spec,
            ),
            compiler_params=parallel,
            cost_estimate=pl.CostEstimate(
                flops=2 * b_pad * (h_pad * e_pad + e_pad * c_pad),
                transcendentals=b_pad,
                bytes_accessed=int(x_bytes + prepped["wrT"].nbytes
                                   + prepped["br"].nbytes + prepped["wnT"].nbytes
                                   + out_bytes)),
        )(x, prepped["wrT"], prepped["br"], prepped["wnT"])
        return out[:B, :C]

    # plain linear mode (fused single matmul)
    out = pl.pallas_call(
        _linear_fused_kernel,
        out_shape=out_shape,
        grid_spec=pltpu.PrefetchScalarGridSpec(
            num_scalar_prefetch=0,
            grid=(nb,),
            in_specs=[
                x_spec,
                pl.BlockSpec((h_pad, c_pad), lambda i: (0, 0)),
                pl.BlockSpec((1, c_pad), lambda i: (0, 0)),
            ],
            out_specs=out_spec,
        ),
        compiler_params=parallel,
        cost_estimate=pl.CostEstimate(
            flops=2 * b_pad * h_pad * c_pad,
            transcendentals=0,
            bytes_accessed=int(x_bytes + prepped["w_fused"].nbytes
                               + prepped["b_fused"].nbytes + out_bytes)),
    )(x, prepped["w_fused"], prepped["b_fused"])
    return out[:B, :C]


# ---------------------------------------------------------------------------
# Pure-JAX reference (mirrors the PyTorch math) for verification
# ---------------------------------------------------------------------------

def _normalize(x, eps=1e-12):
    return x / jnp.maximum(jnp.sqrt(jnp.sum(x * x, axis=1, keepdims=True)), eps)


def reference_forward(cls_output, params, *, euclidean=False,
                      kernel_approx=False):
    pooled = cls_output @ params["reduce_weight"].T + params["reduce_bias"]
    if kernel_approx:
        gamma = 1.0
        pn = _normalize(pooled)
        wn = _normalize(params["weight"])
        po = jnp.exp(pn @ params["map_weight"].T * gamma / 2 - gamma / 2)
        pw = jnp.exp(wn @ params["map_weight"].T * gamma / 2 - gamma / 2)
        return po @ pw.T
    if euclidean:
        pn = _normalize(pooled)
        wn = _normalize(params["weight"])
        p_sq = jnp.sum(pn ** 2, axis=1, keepdims=True)
        w_sq = jnp.sum(wn ** 2, axis=1, keepdims=True)
        return pn @ wn.T - w_sq.T - p_sq + 2.0
    return pooled @ params["weight"].T + params["bias"]


# ---------------------------------------------------------------------------
# Deterministic parameter construction (matches __init__ shapes / init rules)
# ---------------------------------------------------------------------------

def make_params(key, hidden_size, num_classes, expansion_scale=24,
                embedding_size=64):
    k1, k2, k3, k4 = jax.random.split(key, 4)
    # nn.Linear(hidden_size, embedding_size): U(-1/sqrt(H), 1/sqrt(H))
    bound_lin = 1.0 / (hidden_size ** 0.5)
    reduce_weight = jax.random.uniform(
        k1, (embedding_size, hidden_size), jnp.float32, -bound_lin, bound_lin)
    reduce_bias = jax.random.uniform(
        k2, (embedding_size,), jnp.float32, -bound_lin, bound_lin)
    # classification weight: xavier_uniform_, bias zeros
    bound_xav = (6.0 / (num_classes + embedding_size)) ** 0.5
    weight = jax.random.uniform(
        k3, (num_classes, embedding_size), jnp.float32, -bound_xav, bound_xav)
    bias = jnp.zeros((num_classes,), jnp.float32)
    # kernel approximation map: normal(0, 1), bias zeros (bias unused in forward)
    expanded = embedding_size * expansion_scale
    map_weight = jax.random.normal(k4, (expanded, embedding_size), jnp.float32)
    map_bias = jnp.zeros((expanded,), jnp.float32)
    return dict(reduce_weight=reduce_weight, reduce_bias=reduce_bias,
                weight=weight, bias=bias,
                map_weight=map_weight, map_bias=map_bias)


if __name__ == "__main__":
    B, H, C = 2, 32, 8          # batch, backbone hidden_size, num_classes
    key = jax.random.PRNGKey(0)
    kp, kx = jax.random.split(key)
    params = make_params(kp, hidden_size=H, num_classes=C, expansion_scale=24)
    prepped = prepare_params(params)    # one-time static weight prep

    # synthetic CLS embedding (stands in for pretrained last_hidden_state[:, 0])
    cls_output = jax.random.normal(kx, (B, H), jnp.float32)

    ok = True
    for mode in ("linear", "euclidean", "kernel_approx"):
        kwargs = dict(euclidean=(mode == "euclidean"),
                      kernel_approx=(mode == "kernel_approx"))
        out = llm_classifier_forward(cls_output, prepped, **kwargs)
        out = jax.block_until_ready(out)
        ref = reference_forward(cls_output, params, **kwargs)
        # bf16 MXU operands with f32 accumulation -> ~1e-2-level tolerance
        if not jnp.allclose(out, ref, rtol=2e-2, atol=2e-2):
            ok = False
            print(f"mode={mode} mismatch: max abs err "
                  f"{float(jnp.max(jnp.abs(out - ref)))}")

    if ok:
        print("KERNEL_OK")
</pallas_src>

<mosaic_0001>
module attributes {stable_mosaic.version = 11 : i64} {
  func.func @_linear_fused_kernel(%arg0: i32, %arg1: memref<2x128xf32, #tpu.memory_space<vmem>>, %arg2: memref<128x128xbf16, #tpu.memory_space<vmem>>, %arg3: memref<1x128xf32, #tpu.memory_space<vmem>>, %arg4: memref<2x128xf32, #tpu.memory_space<vmem>>) attributes {dimension_semantics = [#tpu.dimension_semantics<parallel>], iteration_bounds = array<i64: 1>, scalar_prefetch = 0 : i64, scratch_operands = 0 : i64, tpu.core_type = #tpu.core_type<tc>, window_params = [{transform_indices = @transform_0, window_bounds = array<i64: 2, 128>}, {pipeline_mode = #tpu.pipeline_mode<synchronous>, transform_indices = @transform_1, window_bounds = array<i64: 128, 128>}, {pipeline_mode = #tpu.pipeline_mode<synchronous>, transform_indices = @transform_2, window_bounds = array<i64: 1, 128>}, {transform_indices = @transform_3, window_bounds = array<i64: 2, 128>}]} {
    %c0 = arith.constant 0 : index
    %c0_0 = arith.constant 0 : index
    %0 = vector.load %arg1[%c0, %c0_0] : memref<2x128xf32, #tpu.memory_space<vmem>>, vector<2x128xf32>
    %1 = arith.truncf %0 : vector<2x128xf32> to vector<2x128xbf16>
    %c0_1 = arith.constant 0 : index
    %c0_2 = arith.constant 0 : index
    %2 = vector.load %arg2[%c0_1, %c0_2] : memref<128x128xbf16, #tpu.memory_space<vmem>>, vector<128x128xbf16>
    %cst = arith.constant dense<0.000000e+00> : vector<2x128xf32>
    %3 = tpu.matmul %1, %2, %cst {dimension_numbers = #tpu.dot_dimension_numbers<[1], [0], [0], [1], [0, 0, 1, 1], [], []>} : vector<2x128xbf16>, vector<128x128xbf16>, vector<2x128xf32> -> vector<2x128xf32>
    %c0_3 = arith.constant 0 : index
    %c0_4 = arith.constant 0 : index
    %4 = vector.load %arg3[%c0_3, %c0_4] : memref<1x128xf32, #tpu.memory_space<vmem>>, vector<1x128xf32>
    %5 = vector.broadcast %4 : vector<1x128xf32> to vector<2x128xf32>
    %6 = arith.addf %3, %5 : vector<2x128xf32>
    %c0_5 = arith.constant 0 : index
    %c0_6 = arith.constant 0 : index
    %7 = vector.load %arg4[%c0_5, %c0_6] : memref<2x128xf32, #tpu.memory_space<vmem>>, vector<2x128xf32>
    tpu.vector_store %arg4[%c0_5, %c0_6], %6 {strides = array<i32>} : memref<2x128xf32, #tpu.memory_space<vmem>>, vector<2x128xf32>,
    return
  }
  func.func @transform_0(%arg0: i32) -> (i32, i32) {
    %c0_i32 = arith.constant 0 : i32
    %c0_i32_0 = arith.constant 0 : i32
    return %arg0, %c0_i32 : i32, i32
  }
  func.func @transform_1(%arg0: i32) -> (i32, i32) {
    %c0_i32 = arith.constant 0 : i32
    %c0_i32_0 = arith.constant 0 : i32
    %c0_i32_1 = arith.constant 0 : i32
    return %c0_i32, %c0_i32_0 : i32, i32
  }
  func.func @transform_2(%arg0: i32) -> (i32, i32) {
    %c0_i32 = arith.constant 0 : i32
    %c0_i32_0 = arith.constant 0 : i32
    %c0_i32_1 = arith.constant 0 : i32
    return %c0_i32, %c0_i32_0 : i32, i32
  }
  func.func @transform_3(%arg0: i32) -> (i32, i32) {
    %c0_i32 = arith.constant 0 : i32
    %c0_i32_0 = arith.constant 0 : i32
    return %arg0, %c0_i32 : i32, i32
  }
}

</mosaic_0001>

<bundles_post_ra>
// kernel: tpu_custom_call.1
= control target key start
LH: loop header
LB: loop body
LE: loop exit
PB: predicated region body
PF: predicated region fallthrough
CT: control target
= control target key end

     0   :  { %8 = vsyncpa [#allocation3], 0  ;;  %s308_s0 = inlined_call_operand.hbm [shape: f32[2,128], index: 0, kind: input, shape index: {}]   ;;  %s309_s1 = inlined_call_operand.hbm [shape: bf16[128,128], index: 1, kind: input, shape index: {}]   ;;  %s310_s2 = inlined_call_operand.vmem [shape: f32[1,128], index: 2, kind: input, shape index: {}]   ;;  %s311_s3 = inlined_call_operand.hbm [shape: f32[2,128], index: 3, kind: output, shape index: {}]  }
   0x1   :  { %9 = vsyncpa [#allocation6], 0 }
   0x2   :  { %10 = vsyncpa [#allocation4], 0  ;;  %s16_s14 = sshll.u32 %s308_s0, 4  ;;  %s271_s15 = smov [#allocation2]   ;;  %s17_s14 = int_to_ptr.hbm [resolvable:$true] %s16_s14 }
   0x3   :  { %s18_s16 = sshll.u32 %s271_s15, 4  ;;  %s26_s19 = sshll.u32 %s309_s1, 4  ;;  %s19_s16 = int_to_ptr.vmem [resolvable:$true] %s18_s16  ;;  %s27_s19 = int_to_ptr.hbm [resolvable:$true] %s26_s19 }
   0x4   :  { %21 = dma.hbm_to_vmem [thread:$0]  %s17_s14, 32, %s19_s16, [#allocation3]  }
   0x5   :  { %s272_s20 = smov [#allocation5]   ;;  %s273_s22 = smov 64  }
   0x6   :  { %s28_s21 = sshll.u32 %s272_s20, 4  ;;  %s274_s23 = smov 4   ;;  %s29_s21 = int_to_ptr.vmem [resolvable:$true] %s28_s21 }
   0x7   :  { %34 = dma.hbm_to_vmem [thread:$0]  %s27_s19, 1024, %s29_s21, [#allocation6], %s273_s22, %s273_s22, %s274_s23  }
   0x8   :  { %265 = dma.done.wait [#allocation3], 32  }
   0x9   :  { %266 = vsyncadd [#allocation3], 4294967264 }
   0xa   :  { %267 = dma.done.wait [#allocation6], 1024  }
   0xb   :  { %268 = vsyncadd [#allocation6], 4294966272  ;;  %v186_v0 = vld [vmem:[#allocation5 + $0x38] sm:$0xff]  ;;  %v185_v1 = vld [vmem:[#allocation5 + $0x30] sm:$0xff]  ;;  %s275_s24 = smov [#allocation7]   ;;  %s136_s28 = sshll.u32 %s311_s3, 4  ;;  %s137_s28 = int_to_ptr.hbm [resolvable:$true] %s136_s28 }
   0xc   :  { %115 = vmatpush.bf16.msra.mxu0 %v186_v0  ;;  %v184_v2 = vld [vmem:[#allocation5 + $0x28] sm:$0xff]  ;;  %v183_v3 = vld [vmem:[#allocation5 + $0x20] sm:$0xff]  ;;  %v182_v4 = vld [vmem:[#allocation5 + $0x18] sm:$0xff]  ;;  %s134_s25 = sshll.u32 %s275_s24, 4  ;;  %s135_s25 = int_to_ptr.vmem [resolvable:$true] %s134_s25 }
   0xd   :  { %v181_v5 = vld [vmem:[#allocation5 + $0x10] sm:$0xff]  ;;  %v180_v6 = vld [vmem:[#allocation5 + $0x8] sm:$0xff]  ;;  %v179_v7 = vld [vmem:[#allocation5] sm:$0xff] }
   0xe   :  { %v45_v8 = vld [vmem:[#allocation2] sm:$0x3] }
   0xf   :  { %v46_v9 = vpack.c.bf16 %v45_v8, %v45_v8  ;;  %v192_v10 = vld [vmem:[%s310_s2] ss:$0 sm:$0xff] }
  0x10   :  { %116 = vmatpush.bf16.msra.mxu0 %v185_v1 }
  0x14   :  { %117 = vmatpush.bf16.msra.mxu0 %v184_v2 }
  0x18   :  { %118 = vmatpush.bf16.msra.mxu0 %v183_v3 }
  0x1c   :  { %119 = vmatpush.bf16.msra.mxu0 %v182_v4 }
  0x20   :  { %120 = vmatpush.bf16.msra.mxu0 %v181_v5 }
  0x24   :  { %121 = vmatpush.bf16.msra.mxu0 %v180_v6 }
  0x28   :  { %122 = vmatpush.bf16.msra.mxu0 %v179_v7 }
  0x2b   :  { %123 = vmatmul.bf16.vlgmr.msra.gmra.mxu0 %v46_v9 }
  0xa8   :  { %v124_v11 = vpop.f32.mrf.mxu0 }
  0xa9   :  { %v125_v12 = vadd.f32 %v192_v10, %v124_v11 }
  0xab   :  { %128 = vst [vmem:[#allocation7] sm:$0x3] %v125_v12 }
  0xac   :  { %139 = dma.vmem_to_hbm [thread:$0]  %s135_s25, 32, %s137_s28, [#allocation4]  }
  0xb0   :  { %v126_v13 = vpop.f32.mrf.mxu0 }
  0xb1   :  { %269 = dma.done.wait [#allocation4], 32  }
  0xb2   :  { %270 = vsyncadd [#allocation4], 4294967264 }
  0xb3   :  { %144 = vsyncpa [#allocation3], 1 }
  0xb4   :  { %145 = vsyncpa [#allocation6], 1 }
  0xb5   :  { %146 = vsyncpa [#allocation4], 1 }

</bundles_post_ra>
